<compile_context>
chip_gen: v5e
topology: v5e:2x2
jax: 0.10.0
libtpu: 0.0.40
codegen_flags: <defaults>
</compile_context>

<pallas_src>
import numpy as np
import jax
import jax.numpy as jnp
from jax.experimental import pallas as pl
from jax.experimental.pallas import tpu as pltpu


# ----------------------------- Pallas kernels ------------------------------

def _gather_rows_vmem_kernel(idx_ref, n_ref, w_ref, out_ref):
    """Fast path: whole (V, E_pad) table resident in VMEM; per-row vld/vst copies.

    idx_ref: (N_pad,) int32 SMEM (scalar prefetch).  Padding entries hold 0 (a valid
             row) and the padded output rows are sliced off by the caller.
    n_ref:   (1,) int32 SMEM (unused here).
    w_ref:   (V, E_pad) VMEM block (same block for every grid step -> fetched once).
    out_ref: (tm, E_pad) VMEM output tile.
    """
    del n_ref
    tm = out_ref.shape[0]
    base = pl.program_id(0) * tm

    @pl.loop(0, tm)
    def _(t):
        row = idx_ref[base + t]
        out_ref[pl.ds(t, 1), :] = w_ref[pl.ds(row, 1), :]


def _gather_rows_hbm_kernel(idx_ref, n_ref, w_hbm, out_ref, sem):
    """Large-table path: table stays in HBM; per-row async DMAs into the output tile.

    All copies share one DMA semaphore and have identical size, so each wait retires
    exactly one copy; every copy issued in this step is waited on before returning.
    The tail guard (base + t < n) skips DMAs for padding rows entirely.
    """
    tm = out_ref.shape[0]
    base = pl.program_id(0) * tm
    n = n_ref[0]

    # Issue all row DMAs first (they overlap) ...
    @pl.loop(0, tm)
    def _(t):
        @pl.when(base + t < n)
        def _():
            row = idx_ref[base + t]
            pltpu.make_async_copy(
                w_hbm.at[pl.ds(row, 1), :],      # (1, E_pad) row in HBM
                out_ref.at[pl.ds(t, 1), :],      # (1, E_pad) row of the out tile
                sem.at[0],
            ).start()

    # ... then wait for all of them (same count / same per-copy size as the starts).
    @pl.loop(0, tm)
    def _(t):
        @pl.when(base + t < n)
        def _():
            pltpu.make_async_copy(
                w_hbm.at[pl.ds(0, 1), :],
                out_ref.at[pl.ds(0, 1), :],
                sem.at[0],
            ).wait()


# ------------------------------ Host wrapper --------------------------------

_FAST_PATH_TABLE_BYTES = 24 << 20   # keep headroom on v7x's 64 MiB physical VMEM


def embedding_lookup(indices, weight: jax.Array, *, tm: int = 256,
                     out_dim=None, force_hbm_gather: bool = False) -> jax.Array:
    """Pallas embedding gather: indices [N] -> rows of weight [V, E_pad] -> [N, out_dim].

    `weight` must already have its embedding axis padded to a multiple of 128
    (LookupEmbeddingsPallas pads once in __init__).  `out_dim` (default E_pad) is the
    unpadded embedding size to return.
    """
    assert tm > 0 and (tm & (tm - 1)) == 0, "tm must be a power of two"
    indices = np.asarray(indices, dtype=np.int32).reshape(-1)
    n = int(indices.shape[0])
    v, e_pad = weight.shape
    assert e_pad % 128 == 0, "pad the embedding axis to a multiple of 128 once, in __init__"
    out_dim = e_pad if out_dim is None else int(out_dim)

    # Bucket the token count to a power of two (>= tm) to limit recompiles; pad with 0
    # (a valid row) and clamp so no gather / DMA can ever go out of bounds.
    n_pad = max(tm, int(pl.next_power_of_2(max(n, 1))))
    idx_padded = np.zeros((n_pad,), dtype=np.int32)
    idx_padded[:n] = np.clip(indices, 0, v - 1)
    idx_padded = jnp.asarray(idx_padded)
    n_arr = jnp.asarray([n], dtype=np.int32)

    itemsize = np.dtype(weight.dtype).itemsize
    table_bytes = v * e_pad * itemsize
    tile_bytes = tm * e_pad * itemsize          # one (tm, E_pad) output tile
    use_vmem_table = (table_bytes <= _FAST_PATH_TABLE_BYTES) and not force_hbm_gather

    if use_vmem_table:
        kernel = _gather_rows_vmem_kernel
        in_specs = [pl.BlockSpec((v, e_pad), lambda i, idx, nn: (0, 0))]   # resident table
        scratch_shapes = []
        vmem_needed = table_bytes + 2 * tile_bytes + (2 << 20)
    else:
        kernel = _gather_rows_hbm_kernel
        in_specs = [pl.BlockSpec(memory_space=pl.ANY)]                      # table stays in HBM
        scratch_shapes = [pltpu.SemaphoreType.DMA((1,))]
        vmem_needed = 2 * tile_bytes + (2 << 20)
    vmem_limit = int(min(max(vmem_needed, 16 << 20), 48 << 20))

    out = pl.pallas_call(
        kernel,
        out_shape=jax.ShapeDtypeStruct((n_pad, e_pad), weight.dtype),
        grid_spec=pltpu.PrefetchScalarGridSpec(
            num_scalar_prefetch=2,                      # indices + real length -> SMEM
            grid=(n_pad // tm,),
            in_specs=in_specs,
            out_specs=pl.BlockSpec((tm, e_pad), lambda i, idx, nn: (i, 0)),
            scratch_shapes=scratch_shapes,
        ),
        # TODO(synk): on v7x, shard the token axis across both TensorCores
        # (CORE_PARALLEL / pl.core_map) for ~2x aggregate gather throughput.
        compiler_params=pltpu.CompilerParams(
            dimension_semantics=("parallel",),
            vmem_limit_bytes=vmem_limit,
        ),
    )(idx_padded, n_arr, weight)

    # Strip token / lane padding only when present.
    if n_pad != n or e_pad != out_dim:
        out = out[:n, :out_dim]
    return out


# --------------------------- Module equivalent -----------------------------

class LookupEmbeddingsPallas:
    """JAX/Pallas equivalent of LookupEmbeddings.forward.

    vocab: list of words.  embedder_contains: bool mask of which words the pretrained
    embedder covers.  "pretrained" rows come from one PRNG stream, "learned"
    (nn.Embedding) rows from another; learnable or uncovered words use the learned
    row, matching the __init__ / _embed_token logic of the reference module.
    """

    def __init__(self, vocab, emb_size, key, embedder_contains=None, learnable_words=()):
        self.vocab = list(vocab)
        self.word_to_idx = {w: i for i, w in enumerate(self.vocab)}
        self.emb_size = emb_size
        self.learnable_words = set(learnable_words)
        v = len(self.vocab)
        k_pre, k_learn = jax.random.split(key)
        pretrained = jax.random.normal(k_pre, (v, emb_size), jnp.float32)
        learned = jax.random.normal(k_learn, (v, emb_size), jnp.float32) * 0.02
        if embedder_contains is None:
            embedder_contains = np.ones((v,), dtype=bool)
        contains = np.asarray(embedder_contains, dtype=bool)
        is_learnable = np.array([w in self.learnable_words for w in self.vocab], dtype=bool)
        # _embed_token: learnable or not-contained -> learned embedding row,
        # otherwise the pretrained embedder vector.
        use_learned = jnp.asarray(is_learnable | ~contains)[:, None]
        self.weight = jnp.where(use_learned, learned, pretrained)          # [V, E]
        # Lane-dense padding hoisted here: pad E -> multiple of 128 ONCE, not per call.
        e_pad = ((emb_size + 127) // 128) * 128
        if e_pad != emb_size:
            self.weight_padded = jnp.pad(self.weight, ((0, 0), (0, e_pad - emb_size)))
        else:
            self.weight_padded = self.weight

    def _compute_boundaries(self, token_lists):
        return [np.cumsum([0] + [len(tl) for tl in token_lists_for_item])
                for token_lists_for_item in token_lists]

    def forward(self, token_lists):
        # Flatten: for each item, concatenate its token lists (same construction as
        # PackedSequencePlus.from_lists input).
        flat_per_item = [[tok for tl in item for tok in tl] for item in token_lists]
        lengths = [len(f) for f in flat_per_item]
        all_tokens = [tok for f in flat_per_item for tok in f]
        indices = np.asarray([self.word_to_idx[t] for t in all_tokens], np.int32)

        # Hot path: embedding gather in the Pallas kernel.
        all_embs = embedding_lookup(indices, self.weight_padded, out_dim=self.emb_size)

        # TODO(synk): PackedSequencePlus sorts items by length and keeps sort/invert
        # bookkeeping; here we return packed embeddings in item order plus per-item
        # boundaries (per-token embedding values are identical to the reference).
        item_boundaries = np.cumsum([0] + lengths)
        packed = {"data": all_embs, "item_boundaries": item_boundaries}
        return packed, self._compute_boundaries(token_lists)


# --------------------------------- Main ------------------------------------

if __name__ == "__main__":
    key = jax.random.PRNGKey(0)

    # Small synthetic shapes: vocab=64 words, emb_size=128.
    vocab = [f"word{i}" for i in range(64)]
    emb_size = 128
    embedder_contains = np.array([i % 2 == 0 for i in range(len(vocab))])

    module = LookupEmbeddingsPallas(
        vocab, emb_size, key,
        embedder_contains=embedder_contains,
        learnable_words=["word3"],
    )

    # Batch of 2 items, each item is a list of token lists (like column names).
    token_lists = [
        [["word1", "word2"], ["word3"], ["word10", "word11", "word12"]],
        [["word5"], ["word20", "word21"]],
    ]

    packed, boundaries = module.forward(token_lists)
    data = jax.block_until_ready(packed["data"])

    # Reference check against plain jnp.take — the gather is a bit-exact row copy.
    flat = [module.word_to_idx[t] for item in token_lists for tl in item for t in tl]
    ref = jnp.take(module.weight, jnp.asarray(flat, jnp.int32), axis=0)
    np.testing.assert_array_equal(np.asarray(data), np.asarray(ref))

    # Also exercise the large-table (HBM DMA gather + tail guard) path.
    data_hbm = embedding_lookup(np.asarray(flat, np.int32), module.weight_padded,
                                out_dim=emb_size, force_hbm_gather=True)
    data_hbm = jax.block_until_ready(data_hbm)
    np.testing.assert_array_equal(np.asarray(data_hbm), np.asarray(ref))

    assert data.shape == (len(flat), emb_size)
    assert [b.tolist() for b in boundaries] == [[0, 2, 3, 6], [0, 1, 3]]

    print("KERNEL_OK")
</pallas_src>

<mosaic_0001>
module attributes {stable_mosaic.version = 11 : i64} {
  func.func @_gather_rows_vmem_kernel(%arg0: i32, %arg1: memref<256xi32, #tpu.memory_space<smem>>, %arg2: memref<1xi32, #tpu.memory_space<smem>>, %arg3: memref<64x128xf32, #tpu.memory_space<vmem>>, %arg4: memref<256x128xf32, #tpu.memory_space<vmem>>) attributes {dimension_semantics = [#tpu.dimension_semantics<parallel>], iteration_bounds = array<i64: 1>, scalar_prefetch = 2 : i64, scratch_operands = 0 : i64, tpu.core_type = #tpu.core_type<tc>, window_params = [{pipeline_mode = #tpu.pipeline_mode<synchronous>, transform_indices = @transform_0, window_bounds = array<i64: 64, 128>}, {transform_indices = @transform_1, window_bounds = array<i64: 256, 128>}]} {
    %c256_i32 = arith.constant 256 : i32
    %0 = arith.muli %arg0, %c256_i32 : i32
    %c0_i32 = arith.constant 0 : i32
    %c256_i32_0 = arith.constant 256 : i32
    %1 = arith.addi %c0_i32, %c256_i32_0 : i32
    %c1_i32 = arith.constant 1 : i32
    scf.for %arg5 = %c0_i32 to %1 step %c1_i32  : i32 {
      %c1_i32_2 = arith.constant 1 : i32
      %2 = arith.muli %arg5, %c1_i32_2 : i32
      %c0_i32_3 = arith.constant 0 : i32
      %3 = arith.addi %c0_i32_3, %2 : i32
      %4 = arith.addi %0, %3 : i32
      %5 = arith.index_cast %4 : i32 to index
      %6 = memref.load %arg1[%5] : memref<256xi32, #tpu.memory_space<smem>>
      %7 = arith.index_cast %6 : i32 to index
      %c0 = arith.constant 0 : index
      %8 = vector.load %arg3[%7, %c0] : memref<64x128xf32, #tpu.memory_space<vmem>>, vector<1x128xf32>
      %9 = arith.index_cast %3 : i32 to index
      %c0_4 = arith.constant 0 : index
      %10 = vector.load %arg4[%9, %c0_4] : memref<256x128xf32, #tpu.memory_space<vmem>>, vector<1x128xf32>
      tpu.vector_store %arg4[%9, %c0_4], %8 {strides = array<i32>} : memref<256x128xf32, #tpu.memory_space<vmem>>, vector<1x128xf32>,
    }
    %c256_i32_1 = arith.constant 256 : i32
    return
  }
  func.func @transform_0(%arg0: i32, %arg1: memref<256xi32, #tpu.memory_space<smem>>, %arg2: memref<1xi32, #tpu.memory_space<smem>>) -> (i32, i32) {
    %c0_i32 = arith.constant 0 : i32
    %c0_i32_0 = arith.constant 0 : i32
    %c0_i32_1 = arith.constant 0 : i32
    return %c0_i32, %c0_i32_0 : i32, i32
  }
  func.func @transform_1(%arg0: i32, %arg1: memref<256xi32, #tpu.memory_space<smem>>, %arg2: memref<1xi32, #tpu.memory_space<smem>>) -> (i32, i32) {
    %c0_i32 = arith.constant 0 : i32
    %c0_i32_0 = arith.constant 0 : i32
    return %arg0, %c0_i32 : i32, i32
  }
}

</mosaic_0001>

<bundles_post_ra>
// kernel: tpu_custom_call.1
= control target key start
LH: loop header
LB: loop body
LE: loop exit
PB: predicated region body
PF: predicated region fallthrough
CT: control target
= control target key end

     0   :  { %s162_s15 = smov [#allocation3]   ;;  %s196_s0 = inlined_call_operand.vmem [shape: s32[256], index: 0, kind: input, shape index: {}]   ;;  %s197_s1 = inlined_call_operand.<no memory space> [shape: s32[1], index: 1, kind: input, shape index: {}]   ;;  %s198_s2 = inlined_call_operand.hbm [shape: f32[64,128], index: 2, kind: input, shape index: {}]   ;;  %s199_s3 = inlined_call_operand.hbm [shape: f32[256,128], index: 3, kind: output, shape index: {}]  }
   0x1   :  { %s9_s14 = sshll.u32 %s196_s0, 4  ;;  %s10_s14 = int_to_ptr.vmem [resolvable:$true] %s9_s14 }
   0x2   :  { %12 = dma.vmem_to_smem %s10_s14, 32, %s162_s15, [#allocation2] }
   0x3   :  { %152 = dma.done.wait [#allocation2], 32 }
   0x4   :  { %153 = vsyncadd [#allocation2], 4294967264 }
   0x5   :  { %16 = sfence }
   0x6   :  { %17 = vsyncpa [#allocation6], 0 }
   0x7   :  { %18 = vsyncpa [#allocation7], 0  ;;  %s23_s17 = sshll.u32 %s198_s2, 4  ;;  %s163_s18 = smov [#allocation5]   ;;  %s24_s17 = int_to_ptr.hbm [resolvable:$true] %s23_s17 }
   0x8   :  { %s25_s19 = sshll.u32 %s163_s18, 4  ;;  %s164_s20 = smov 128   ;;  %s26_s19 = int_to_ptr.vmem [resolvable:$true] %s25_s19 }
   0x9   :  { %s165_s21 = smov 8  }
   0xa   :  { %31 = dma.hbm_to_vmem [thread:$0]  %s24_s17, 1024, %s26_s19, [#allocation6], %s164_s20, %s164_s20, %s165_s21  }
   0xb   :  { %154 = dma.done.wait [#allocation6], 1024  }
   0xc   :  { %155 = vsyncadd [#allocation6], 4294966272  ;;  %s158_s0 = smov 0  }
   0xd LB: > { %s44_s22 = sld [smem:[#allocation3 + %s160_s0]]  ;;  %s47_s24 = scalar_lea.vmem [#allocation8], %s160_s0  ;;  %s160_s0 = sphi %s158_s0, %s42_s0  }
   0xe   : > { %s42_s0 = sadd.s32 1, %s160_s0  }
   0xf   : > { %p39_p0 = scmp.ge.s32.totalorder %s42_s0, 256  }
  0x10   :  { %s55_s26 = sshll.u32 (%p39_p0), %s199_s3, 4  ;;  %s166_s27 = smov (%p39_p0), [#allocation8]   ;;  %s56_s26 = int_to_ptr.hbm [resolvable:$true] %s55_s26 }
  0x11   :  { %41 = sbr.rel (!%p39_p0) target bundleno = 13 (0xd), region = 37  ;;  %s53_s28 = sshll.u32 (%p39_p0), %s166_s27, 4  ;;  %s54_s28 = int_to_ptr.vmem [resolvable:$true] %s53_s28 }
  0x13   : > { %s45_s23 = scalar_lea.vmem [#allocation5], %s44_s22 }
  0x14   : > { %v46_v0 = vld [vmem:[%s45_s23] sm:$0x1] }
  0x15   : > { %48 = vst [vmem:[%s47_s24] sm:$0x1] %v46_v0 }
  0x16   :  { %61 = dma.vmem_to_hbm [thread:$0]  %s54_s28, 4096, %s56_s26, [#allocation7], %s164_s20, %s164_s20, %s165_s21  }
  0x17   :  { %156 = dma.done.wait [#allocation7], 4096  }
  0x18   :  { %157 = vsyncadd [#allocation7], 4294963200 }
  0x19   :  { %66 = vsyncpa [#allocation6], 1 }
  0x1a   :  { %67 = vsyncpa [#allocation7], 1 }

</bundles_post_ra>
